<compile_context>
chip_gen: v7x
topology: tpu7x:2x2x1
jax: 0.10.0
libtpu: 0.0.40
codegen_flags: <defaults>
</compile_context>

<pallas_src>
import jax
import jax.numpy as jnp
from jax.experimental import pallas as pl
from jax.experimental.pallas import tpu as pltpu


def _make_kernel(bt, t, d, h_dim, c_dim):
    rows = bt * t

    def kernel(x_ref, w_ref, b1_ref, w2_ref, b3_ref, o_ref):
        # x block: (bt*T, D) bf16, already lane/sublane-dense (no 3-D relayout).
        x = x_ref[...]                                             # (rows, D)

        # Fused linear1 | linear3 on the MXU: columns [0:H) hold w1, column H
        # holds w3 (per-token p = x·w3), remaining columns are zero padding.
        hp = jnp.dot(x, w_ref[...],
                     preferred_element_type=jnp.float32)           # (rows, C)

        # linear2 logits: bias + ReLU on the w1 columns, then a lane reduction
        # against the zero-padded w2 row (p / pad columns contribute 0).
        hc = jnp.maximum(hp + b1_ref[...], 0.0)                    # (rows, C)
        logits = jnp.sum(hc * w2_ref[...], axis=-1, keepdims=True)  # (rows, 1)
        # b2 omitted: a constant shift is an exact no-op under softmax.

        p = hp[:, h_dim:h_dim + 1]                                 # (rows, 1)

        # Per-sequence softmax over T (lane axis after the tiny reshape).
        lg = logits.reshape(bt, t)                                 # (bt, T)
        pm = p.reshape(bt, t)                                      # (bt, T)
        m = jnp.max(lg, axis=-1, keepdims=True)
        e = jnp.exp(lg - m)
        denom = jnp.sum(e, axis=-1, keepdims=True)
        att = e * pl.reciprocal(denom, approx=True)                # (bt, T)

        # Fused attention-pool + linear3:  out_b = sum_t att[b,t]*p[b,t] + b3.
        out = jnp.sum(att * pm, axis=-1, keepdims=True) + b3_ref[0]  # (bt, 1)
        o_ref[...] = out.reshape(1, bt).astype(o_ref.dtype)        # lane-dense

    return kernel


def _pick_block_b(B, T, D, target_rows=256, max_block_bytes=2 << 20):
    """Rows per step (bt*T) should cover >= an MXU tile, with the bf16 x block
    around 0.5-2 MiB so per-step overhead is amortized without crowding VMEM."""
    bt = max(1, -(-target_rows // T))                       # ceil(target/T)
    bt = min(bt, max(1, max_block_bytes // max(T * D * 2, 1)))
    if bt >= B:
        return B                                            # single step
    bt = max(16, (bt // 16) * 16)                           # sublane-tile friendly
    return min(bt, B)


def pool_att_ff(x, w1, b1, w2, b2, w3, b3, *, block_b=None):
    """x: (B, T, D) float32.  Weights stored PyTorch-Linear-transposed:
       w1 (D, 2D), b1 (1, 2D), w2 (2D, 1), b2 (1, 1), w3 (D, 1), b3 (1, 1).
       Returns (B, 1) float32 (== linear3 output after squeeze(1))."""
    del b2  # softmax is shift-invariant -> b2 is an exact no-op.
    B, T, D = x.shape
    H = 2 * D
    C = pl.cdiv(H + 1, 128) * 128          # fused weight columns, lane aligned

    bt = _pick_block_b(B, T, D) if block_b is None else min(block_b, B)
    Bp = pl.cdiv(B, bt) * bt
    n_blk = Bp // bt
    rows = bt * T

    # Fused [w1 | w3 | 0] weight (bf16 MXU input) + zero-padded bias / w2 rows.
    w_fused = jnp.zeros((D, C), jnp.float32)
    w_fused = w_fused.at[:, :H].set(w1).at[:, H:H + 1].set(w3)
    w_fused = w_fused.astype(jnp.bfloat16)
    b1c = jnp.zeros((1, C), jnp.float32).at[:, :H].set(b1.reshape(1, H))
    w2c = jnp.zeros((1, C), jnp.float32).at[:, :H].set(w2.reshape(1, H))
    b3s = b3.reshape(1).astype(jnp.float32)                 # (1,) SMEM scalar

    # Pad the batch to a multiple of bt (zero rows are harmless: uniform
    # softmax over p==0; padded outputs sliced off) and flatten to (Bp*T, D)
    # so the kernel sees a 2-D lane/sublane-dense block.
    x_bf = x.astype(jnp.bfloat16)
    if Bp != B:
        x_bf = jnp.pad(x_bf, ((0, Bp - B), (0, 0), (0, 0)))
    x2d = x_bf.reshape(Bp * T, D)

    # Explicit VMEM budget: double-buffered x block + resident weights + the
    # f32 fused-matmul output, with 2x headroom (v5e default scoped VMEM is
    # only 16 MiB; never exceed v7x's 64 MiB physical).
    x_blk_bytes = rows * D * 2
    w_bytes = D * C * 2 + 2 * C * 4
    h_bytes = rows * C * 4
    vmem_limit = int(min(max(2 * (2 * x_blk_bytes + w_bytes + h_bytes),
                             8 << 20), 48 << 20))

    out = pl.pallas_call(
        _make_kernel(bt, T, D, H, C),
        out_shape=jax.ShapeDtypeStruct((n_blk, bt), jnp.float32),
        grid_spec=pl.GridSpec(
            grid=(n_blk,),
            in_specs=[
                pl.BlockSpec((rows, D), lambda i: (i, 0)),           # x (bf16)
                pl.BlockSpec((D, C), lambda i: (0, 0)),              # [w1|w3|0]
                pl.BlockSpec((1, C), lambda i: (0, 0)),              # b1 padded
                pl.BlockSpec((1, C), lambda i: (0, 0)),              # w2 row
                pl.BlockSpec(memory_space=pltpu.MemorySpace.SMEM),   # b3 (1,)
            ],
            out_specs=pl.BlockSpec((1, bt), lambda i: (i, 0)),       # lane-dense
        ),
        compiler_params=pltpu.CompilerParams(
            dimension_semantics=("parallel",),
            vmem_limit_bytes=vmem_limit),
    )(x2d, w_fused, b1c, w2c, b3s)

    return out.reshape(Bp, 1)[:B]


def reference(x, w1, b1, w2, b2, w3, b3):
    """Pure-JAX reference mirroring the kernel numerics (bf16 x / w1 / w3,
    f32 accumulation, exact softmax)."""
    xb = x.astype(jnp.bfloat16).astype(jnp.float32)
    w1b = w1.astype(jnp.bfloat16).astype(jnp.float32)
    w3b = w3.astype(jnp.bfloat16).astype(jnp.float32)
    h = jnp.maximum(jnp.einsum("btd,dh->bth", xb, w1b) + b1.reshape(1, 1, -1), 0.0)
    att = jnp.einsum("bth,ho->bto", h, w2) + b2              # (B, T, 1)
    att = jax.nn.softmax(att, axis=1)                        # softmax over T
    pooled = jnp.einsum("bto,btd->bd", att, xb)              # (B, D)
    return pooled @ w3b + b3                                 # (B, 1)


if __name__ == "__main__":
    B, T, D = 16, 8, 32
    H = 2 * D
    key = jax.random.PRNGKey(0)
    kx, k1, kb1, k2, kb2, k3, kb3 = jax.random.split(key, 7)

    x = jax.random.normal(kx, (B, T, D), dtype=jnp.float32)

    # Deterministic PyTorch-Linear-style init: U(-1/sqrt(fan_in), 1/sqrt(fan_in)).
    def u(k, shape, fan_in):
        bound = 1.0 / jnp.sqrt(fan_in)
        return jax.random.uniform(k, shape, jnp.float32, -bound, bound)

    w1 = u(k1, (D, H), D)       # linear1.weight^T
    b1 = u(kb1, (1, H), D)      # linear1.bias
    w2 = u(k2, (H, 1), H)       # linear2.weight^T
    b2 = u(kb2, (1, 1), H)      # linear2.bias (no-op under softmax)
    w3 = u(k3, (D, 1), D)       # linear3.weight^T
    b3 = u(kb3, (1, 1), D)      # linear3.bias

    out = pool_att_ff(x, w1, b1, w2, b2, w3, b3)
    out = jax.block_until_ready(out)

    ref = reference(x, w1, b1, w2, b2, w3, b3)
    assert out.shape == (B, 1), out.shape
    # Tolerance covers bf16 matmul inputs + approximate (EUP) softmax reciprocal.
    assert jnp.allclose(out, ref, atol=1e-2, rtol=1e-2), (out, ref)

    print("KERNEL_OK")
</pallas_src>

<mosaic_0001>
module attributes {stable_mosaic.version = 11 : i64} {
  func.func @kernel(%arg0: i32, %arg1: memref<128x32xbf16, #tpu.memory_space<vmem>>, %arg2: memref<32x128xbf16, #tpu.memory_space<vmem>>, %arg3: memref<1x128xf32, #tpu.memory_space<vmem>>, %arg4: memref<1x128xf32, #tpu.memory_space<vmem>>, %arg5: memref<1xf32, #tpu.memory_space<smem>>, %arg6: memref<1x16xf32, #tpu.memory_space<vmem>>) attributes {dimension_semantics = [#tpu.dimension_semantics<parallel>], iteration_bounds = array<i64: 1>, scalar_prefetch = 0 : i64, scratch_operands = 0 : i64, tpu.core_type = #tpu.core_type<tc>, window_params = [{transform_indices = @transform_0, window_bounds = array<i64: 128, 32>}, {pipeline_mode = #tpu.pipeline_mode<synchronous>, transform_indices = @transform_1, window_bounds = array<i64: 32, 128>}, {pipeline_mode = #tpu.pipeline_mode<synchronous>, transform_indices = @transform_2, window_bounds = array<i64: 1, 128>}, {pipeline_mode = #tpu.pipeline_mode<synchronous>, transform_indices = @transform_3, window_bounds = array<i64: 1, 128>}, {transform_indices = @transform_4, window_bounds = array<i64: 1>}, {transform_indices = @transform_5, window_bounds = array<i64: 1, 16>}]} {
    %c0 = arith.constant 0 : index
    %c0_0 = arith.constant 0 : index
    %0 = vector.load %arg1[%c0, %c0_0] : memref<128x32xbf16, #tpu.memory_space<vmem>>, vector<128x32xbf16>
    %c0_1 = arith.constant 0 : index
    %c0_2 = arith.constant 0 : index
    %1 = vector.load %arg2[%c0_1, %c0_2] : memref<32x128xbf16, #tpu.memory_space<vmem>>, vector<32x128xbf16>
    %cst = arith.constant dense<0.000000e+00> : vector<128x128xf32>
    %2 = tpu.matmul %0, %1, %cst {dimension_numbers = #tpu.dot_dimension_numbers<[1], [0], [0], [1], [0, 0, 1, 1], [], []>} : vector<128x32xbf16>, vector<32x128xbf16>, vector<128x128xf32> -> vector<128x128xf32>
    %c0_3 = arith.constant 0 : index
    %c0_4 = arith.constant 0 : index
    %3 = vector.load %arg3[%c0_3, %c0_4] : memref<1x128xf32, #tpu.memory_space<vmem>>, vector<1x128xf32>
    %4 = vector.broadcast %3 : vector<1x128xf32> to vector<128x128xf32>
    %5 = arith.addf %2, %4 : vector<128x128xf32>
    %cst_5 = arith.constant 0.000000e+00 : f32
    %6 = vector.broadcast %cst_5 : f32 to vector<128x128xf32>
    %7 = arith.maximumf %5, %6 : vector<128x128xf32>
    %c0_6 = arith.constant 0 : index
    %c0_7 = arith.constant 0 : index
    %8 = vector.load %arg4[%c0_6, %c0_7] : memref<1x128xf32, #tpu.memory_space<vmem>>, vector<1x128xf32>
    %9 = vector.broadcast %8 : vector<1x128xf32> to vector<128x128xf32>
    %10 = arith.mulf %7, %9 : vector<128x128xf32>
    %cst_8 = arith.constant dense<0.000000e+00> : vector<128xf32>
    %11 = vector.multi_reduction <add>, %10, %cst_8 [1] : vector<128x128xf32> to vector<128xf32>
    %12 = vector.shape_cast %11 : vector<128xf32> to vector<128x1xf32>
    %13 = vector.extract_strided_slice %2 {offsets = [0, 64], sizes = [128, 1], strides = [1, 1]} : vector<128x128xf32> to vector<128x1xf32>
    %14 = vector.shape_cast %12 : vector<128x1xf32> to vector<16x8xf32>
    %15 = vector.shape_cast %13 : vector<128x1xf32> to vector<16x8xf32>
    %cst_9 = arith.constant dense<0xFF800000> : vector<16xf32>
    %16 = vector.multi_reduction <maximumf>, %14, %cst_9 [1] : vector<16x8xf32> to vector<16xf32>
    %17 = vector.shape_cast %16 : vector<16xf32> to vector<16x1xf32>
    %18 = vector.broadcast %17 : vector<16x1xf32> to vector<16x8xf32>
    %19 = arith.subf %14, %18 : vector<16x8xf32>
    %20 = math.exp %19 : vector<16x8xf32>
    %cst_10 = arith.constant dense<0.000000e+00> : vector<16xf32>
    %21 = vector.multi_reduction <add>, %20, %cst_10 [1] : vector<16x8xf32> to vector<16xf32>
    %22 = vector.shape_cast %21 : vector<16xf32> to vector<16x1xf32>
    %23 = tpu.reciprocal %22 {approx = true} : vector<16x1xf32> -> vector<16x1xf32>
    %24 = vector.broadcast %23 : vector<16x1xf32> to vector<16x8xf32>
    %25 = arith.mulf %20, %24 : vector<16x8xf32>
    %26 = arith.mulf %25, %15 : vector<16x8xf32>
    %cst_11 = arith.constant dense<0.000000e+00> : vector<16xf32>
    %27 = vector.multi_reduction <add>, %26, %cst_11 [1] : vector<16x8xf32> to vector<16xf32>
    %28 = vector.shape_cast %27 : vector<16xf32> to vector<16x1xf32>
    %c0_12 = arith.constant 0 : index
    %29 = memref.load %arg5[%c0_12] : memref<1xf32, #tpu.memory_space<smem>>
    %30 = vector.broadcast %29 : f32 to vector<16x1xf32>
    %31 = arith.addf %28, %30 : vector<16x1xf32>
    %32 = vector.shape_cast %31 : vector<16x1xf32> to vector<1x16xf32>
    %c0_13 = arith.constant 0 : index
    %c0_14 = arith.constant 0 : index
    %33 = vector.load %arg6[%c0_13, %c0_14] : memref<1x16xf32, #tpu.memory_space<vmem>>, vector<1x16xf32>
    tpu.vector_store %arg6[%c0_13, %c0_14], %32 {strides = array<i32>} : memref<1x16xf32, #tpu.memory_space<vmem>>, vector<1x16xf32>,
    return
  }
  func.func @transform_0(%arg0: i32) -> (i32, i32) {
    %c0_i32 = arith.constant 0 : i32
    %c0_i32_0 = arith.constant 0 : i32
    return %arg0, %c0_i32 : i32, i32
  }
  func.func @transform_1(%arg0: i32) -> (i32, i32) {
    %c0_i32 = arith.constant 0 : i32
    %c0_i32_0 = arith.constant 0 : i32
    %c0_i32_1 = arith.constant 0 : i32
    return %c0_i32, %c0_i32_0 : i32, i32
  }
  func.func @transform_2(%arg0: i32) -> (i32, i32) {
    %c0_i32 = arith.constant 0 : i32
    %c0_i32_0 = arith.constant 0 : i32
    %c0_i32_1 = arith.constant 0 : i32
    return %c0_i32, %c0_i32_0 : i32, i32
  }
  func.func @transform_3(%arg0: i32) -> (i32, i32) {
    %c0_i32 = arith.constant 0 : i32
    %c0_i32_0 = arith.constant 0 : i32
    %c0_i32_1 = arith.constant 0 : i32
    return %c0_i32, %c0_i32_0 : i32, i32
  }
  func.func @transform_4(%arg0: i32) -> i32 {
    %c0_i32 = arith.constant 0 : i32
    %c0_i32_0 = arith.constant 0 : i32
    return %c0_i32 : i32
  }
  func.func @transform_5(%arg0: i32) -> (i32, i32) {
    %c0_i32 = arith.constant 0 : i32
    %c0_i32_0 = arith.constant 0 : i32
    return %arg0, %c0_i32 : i32, i32
  }
}

</mosaic_0001>

<bundles_post_ra>
// kernel: tpu_custom_call.1
= control target key start
LH: loop header
LB: loop body
LE: loop exit
PB: predicated region body
PF: predicated region fallthrough
CT: control target
= control target key end

     0   :  { %vm95_vm0 = vcmask 261120   ;;  %s1696_s0 = inlined_call_operand.vmem [shape: bf16[128,32], index: 0, kind: input, shape index: {}]   ;;  %s1697_s1 = inlined_call_operand.vmem [shape: bf16[32,128], index: 1, kind: input, shape index: {}]   ;;  %s1698_s2 = inlined_call_operand.vmem [shape: f32[1,128], index: 2, kind: input, shape index: {}]   ;;  %s1699_s3 = inlined_call_operand.vmem [shape: f32[1,128], index: 3, kind: input, shape index: {}]   ;;  %s1700_s4 = inlined_call_operand.<no memory space> [shape: f32[1], index: 4, kind: input, shape index: {}]   ;;  %s1701_s5 = inlined_call_operand.hbm [shape: f32[1,16], index: 5, kind: output, shape index: {}]  }
   0x1   :  { %v1126_v0 = vld [vmem:[%s1697_s1] sm:$0xff]   ;;  %v1127_v1 = vld [vmem:[%s1697_s1 + $0x8] sm:$0xff]   ;;  %v1132_v6 = vld [vmem:[%s1696_s0 + $0x10] sm:$0xff]  }
   0x2   :  { %1097 = vmatprep.subr.bf16.mxu0 %v1126_v0  ;;  %1117 = vmatprep.subr.bf16.mxu1 %v1126_v0  ;;  %v1128_v2 = vld [vmem:[%s1696_s0] sm:$0xff]   ;;  %v1130_v4 = vld [vmem:[%s1696_s0 + $0x8] sm:$0xff]   ;;  %v1134_v7 = vld [vmem:[%s1696_s0 + $0x30] sm:$0xff]  }
   0x3   :  { %1098 = vmatpush3.bf16.msra.mxu0 %v1126_v0  ;;  %1119 = vmatpush3.bf16.msra.mxu1 %v1126_v0  ;;  %v1129_v3 = vld [vmem:[%s1696_s0 + $0x20] sm:$0xff]   ;;  %v1131_v5 = vld [vmem:[%s1696_s0 + $0x28] sm:$0xff]  }
   0x4   :  { %1099 = vmatprep.subr.bf16.mxu0 %v1127_v1  ;;  %1118 = vmatprep.subr.bf16.mxu1 %v1127_v1 }
   0x5   :  { %1101 = vmatprep.mubr.msk.bf16.mxu0 %vm95_vm0, %v1128_v2  ;;  %1109 = vmatprep.mubr.msk.bf16.mxu1 %vm95_vm0, %v1129_v3 }
   0x7   :  { %1100 = vmatpush3.bf16.msra.mxu0 %v1127_v1  ;;  %1120 = vmatpush3.bf16.msra.mxu1 %v1127_v1 }
   0xa   :  { %1102 = vmatmul.mubr.msk.bf16.vlgmr.msra.gmra.mrb[0].mxu0 %vm95_vm0, %v1130_v4  ;;  %1110 = vmatmul.mubr.msk.bf16.vlgmr.msra.gmra.mrb[0].mxu1 %vm95_vm0, %v1131_v5 }
   0xb   :  { %11 = vsyncpa [#allocation4], 0  ;;  %1105 = vmatprep.mubr.msk.bf16.mxu0 %vm95_vm0, %v1132_v6  ;;  %1113 = vmatprep.mubr.msk.bf16.mxu1 %vm95_vm0, %v1134_v7  ;;  %v1133_v8 = vld [vmem:[%s1696_s0 + $0x18] sm:$0xff]   ;;  %v1270_v10 = vld [vmem:[%s1698_s2] ss:$0 sm:$0xff]  ;;  %vm393_vm1 = vcmask 1041409  }
   0xc   :  { %v1135_v9 = vld [vmem:[%s1696_s0 + $0x38] sm:$0xff]   ;;  %v1295_v21 = vld [vmem:[%s1699_s3] ss:$0 sm:$0xff]  ;;  %vm395_vm2 = vcmask 1042434   ;;  %vm397_vm3 = vcmask 1043459   ;;  %vm399_vm4 = vcmask 1044484  }
   0xd   :  { %vm401_vm5 = vcmask 1045509   ;;  %vm403_vm6 = vcmask 1046534   ;;  %vm405_vm7 = vcmask 1047559   ;;  %vm416_vm8 = vcmask 64512   ;;  %s1197_s3 = smov 64   ;;  %s1198_s16 = smov [#allocation3]  }
   0xe   :  { %s1059_s17 = sshll.u32 %s1198_s16, 4  ;;  %vm1048_vm9 = vcmask 130112   ;;  %vm1051_vm10 = vcmask 122880   ;;  %s1060_s17 = int_to_ptr.vmem [resolvable:$true] %s1059_s17 }
   0xf   :  { %s1172_s18 = scalar_lea.vmem %s1060_s17, 16  ;;  %s1176_s19 = scalar_lea.vmem %s1060_s17, 32 }
  0x10   :  { %p1173_p0 = scmp.ne.s32.totalorder %s1060_s17, %s1172_s18  ;;  %p1177_p1 = scmp.lt.s32.totalorder %s1060_s17, %s1060_s17 }
  0x11   :  { %p1178_p2 = scmp.lt.s32.totalorder %s1176_s19, %s1172_s18 }
  0x12   :  { %1106 = vmatmul.mubr.msk.bf16.gmra.mrb[4].mxu0 %vm95_vm0, %v1133_v8  ;;  %1114 = vmatmul.mubr.msk.bf16.gmra.mrb[4].mxu1 %vm95_vm0, %v1135_v9 }
  0x13   :  { %p1179_p3 = por %p1178_p2, %p1177_p1 }
  0x15   :  { %p1180_p4 = pnand %p1179_p3, %p1173_p0 }
  0xdd   :  { %v1272_v11 = vpop.f32.mrb[0].mxu0  ;;  %v1274_v12 = vpop.f32.mrb[0].mxu1 }
  0xde   :  { %v226_v13 = vadd.f32 %v1272_v11, %v1270_v10  ;;  %v234_v14 = vadd.f32 %v1274_v12, %v1270_v10  ;;  %v1280_v15 = vpop.f32.mrb[1].mxu0  ;;  %v1282_v16 = vpop.f32.mrb[1].mxu1 }
  0xdf   :  { %v224_v17 = vadd.f32 %v1270_v10, %v1280_v15  ;;  %v1286_v18 = vpop.f32.mrb[2].mxu0  ;;  %v232_v19 = vadd.f32 %v1270_v10, %v1282_v16  ;;  %v1290_v20 = vpop.f32.mrb[2].mxu1 }
  0xe0   :  { %v1297_v22 = vpop.f32.mrb[3].mxu0  ;;  %v1299_v23 = vpop.f32.mrb[3].mxu1  ;;  %v250_v24 = vmax.f32 %v234_v14, 0.0  ;;  %v242_v25 = vmax.f32 %v226_v13, 0.0  ;;  %v227_v26 = vadd.f32 %v1286_v18, %v1270_v10  ;;  %v235_v29 = vadd.f32 %v1290_v20, %v1270_v10 }
  0xe1   :  { %v248_v27 = vmax.f32 %v232_v19, 0.0  ;;  %v240_v28 = vmax.f32 %v224_v17, 0.0  ;;  %v225_v33 = vadd.f32 %v1270_v10, %v1297_v22  ;;  %v233_v38 = vadd.f32 %v1270_v10, %v1299_v23 }
  0xe2   :  { %v273_v30 = vmul.f32 %v1295_v21, %v250_v24  ;;  %v265_v31 = vmul.f32 %v1295_v21, %v242_v25  ;;  %v243_v36 = vmax.f32 %v227_v26, 0.0  ;;  %v251_v37 = vmax.f32 %v235_v29, 0.0 }
  0xe3   :  { %v271_v32 = vmul.f32 %v1295_v21, %v248_v27  ;;  %v263_v39 = vmul.f32 %v1295_v21, %v240_v28  ;;  %v241_v48 = vmax.f32 %v225_v33, 0.0  ;;  %v249_v49 = vmax.f32 %v233_v38, 0.0 }
  0xe4   :  { %299 = vadd.xlane.f32.xlu1 %v273_v30  ;;  %283 = vadd.xlane.f32.xlu0 %v265_v31  ;;  %v274_v50 = vmul.f32 %v1295_v21, %v251_v37  ;;  %v266_v51 = vmul.f32 %v1295_v21, %v243_v36  ;;  %v327_v25 = vlaneseq }
  0xe5   :  { %v1310_v34 = vpop.f32.mrb[4].mxu0  ;;  %v1312_v35 = vpop.f32.mrb[4].mxu1  ;;  %v272_v56 = vmul.f32 %v1295_v21, %v249_v49  ;;  %v264_v57 = vmul.f32 %v1295_v21, %v241_v48 }
  0xe6   :  { %v1317_v40 = vpop.f32.mrb[5].mxu0  ;;  %v1319_v41 = vpop.f32.mrb[5].mxu1  ;;  %v230_v44 = vadd.f32 %v1310_v34, %v1270_v10  ;;  %v238_v46 = vadd.f32 %v1312_v35, %v1270_v10  ;;  %v1369_v28 = vand.u32 127, %v327_v25  ;;  %v1371_v29 = vshrl.u32 %v327_v25, 7 }
  0xe7   :  { %v1321_v42 = vpop.f32.mrb[6].mxu0  ;;  %v1323_v43 = vpop.f32.mrb[6].mxu1  ;;  %v236_v54 = vadd.f32 %v1270_v10, %v1319_v41  ;;  %v228_v55 = vadd.f32 %v1270_v10, %v1317_v40 }
  0xe8   :  { %295 = vadd.xlane.f32.xlu1 %v271_v32  ;;  %279 = vadd.xlane.f32.xlu0 %v263_v39  ;;  %v1327_v45 = vpop.f32.mrb[7].mxu0  ;;  %v1331_v47 = vpop.f32.mrb[7].mxu1  ;;  %v246_v52 = vmax.f32 %v230_v44, 0.0  ;;  %v254_v53 = vmax.f32 %v238_v46, 0.0  ;;  %v231_v1 = vadd.f32 %v1321_v42, %v1270_v10  ;;  %v239_v3 = vadd.f32 %v1323_v43, %v1270_v10 }
  0xe9   :  { %v252_v58 = vmax.f32 %v236_v54, 0.0  ;;  %v244_v61 = vmax.f32 %v228_v55, 0.0  ;;  %v229_v62 = vadd.f32 %v1270_v10, %v1327_v45  ;;  %v237_v63 = vadd.f32 %v1270_v10, %v1331_v47 }
  0xea   :  { %v277_v59 = vmul.f32 %v1295_v21, %v254_v53  ;;  %v269_v60 = vmul.f32 %v1295_v21, %v246_v52  ;;  %v247_v6 = vmax.f32 %v231_v1, 0.0  ;;  %v255_v7 = vmax.f32 %v239_v3, 0.0 }
  0xeb   :  { %v275_v0 = vmul.f32 %v1295_v21, %v252_v58  ;;  %v245_v2 = vmax.f32 %v229_v62, 0.0  ;;  %v253_v4 = vmax.f32 %v237_v63, 0.0  ;;  %v267_v5 = vmul.f32 %v1295_v21, %v244_v61 }
  0xec   :  { %301 = vadd.xlane.f32.xlu1 %v274_v50  ;;  %285 = vadd.xlane.f32.xlu0 %v266_v51  ;;  %v278_v13 = vmul.f32 %v1295_v21, %v255_v7  ;;  %v270_v14 = vmul.f32 %v1295_v21, %v247_v6  ;;  %v1379_v31 = vsub.s32 %v1369_v28, %v1371_v29 }
  0xed   :  { %v276_v8 = vmul.f32 %v1295_v21, %v253_v4  ;;  %v268_v9 = vmul.f32 %v1295_v21, %v245_v2 }
  0xf0   :  { %297 = vadd.xlane.f32.xlu1 %v272_v56  ;;  %281 = vadd.xlane.f32.xlu0 %v264_v57 }
  0xf4   :  { %307 = vadd.xlane.f32.xlu1 %v277_v59  ;;  %291 = vadd.xlane.f32.xlu0 %v269_v60 }
  0xf8   :  { %303 = vadd.xlane.f32.xlu1 %v275_v0  ;;  %287 = vadd.xlane.f32.xlu0 %v267_v5 }
  0xfc   :  { %305 = vadd.xlane.f32.xlu1 %v276_v8  ;;  %289 = vadd.xlane.f32.xlu0 %v268_v9 }
 0x100   :  { %309 = vadd.xlane.f32.xlu1 %v278_v13  ;;  %293 = vadd.xlane.f32.xlu0 %v270_v14 }
 0x171   :  { %v1357_v10 = vpop.xlane.xlu1 %299  ;;  %v1359_v17 = vpop.xlane.xlu0 %283 }
 0x172   :  { %v372_v48 = vrot.slane %v1357_v10, %v1379_v31  ;;  %v340_v49 = vrot.slane %v1359_v17, %v1379_v31 }
 0x175   :  { %v1361_v19 = vpop.xlane.xlu1 %295  ;;  %v1363_v24 = vpop.xlane.xlu0 %279 }
 0x176   :  { %v364_v38 = vrot.slane %v1361_v19, %v1379_v31  ;;  %v332_v39 = vrot.slane %v1363_v24, %v1379_v31 }
 0x179   :  { %v1365_v26 = vpop.xlane.xlu1 %301  ;;  %v1367_v27 = vpop.xlane.xlu0 %285 }
 0x17a   :  { %v376_v56 = vrot.slane %v1365_v26, %v1379_v31  ;;  %v344_v57 = vrot.slane %v1367_v27, %v1379_v31 }
 0x17d   :  { %v1373_v21 = vpop.xlane.xlu1 %297  ;;  %v1375_v30 = vpop.xlane.xlu0 %281 }
 0x17e   :  { %v368_v32 = vrot.slane %v1373_v21, %v1379_v31  ;;  %v336_v33 = vrot.slane %v1375_v30, %v1379_v31 }
 0x180   :  { %v407_v44 = vsel %vm393_vm1, %v368_v32, %v364_v38  ;;  %v394_v46 = vsel %vm393_vm1, %v336_v33, %v332_v39  ;;  %v1196_v39 = vmov 0  }
 0x181   :  { %v1385_v36 = vpop.xlane.xlu1 %307  ;;  %v1387_v37 = vpop.xlane.xlu0 %291  ;;  %v408_v52 = vsel %vm395_vm2, %v372_v48, %v407_v44  ;;  %v396_v53 = vsel %vm395_vm2, %v340_v49, %v394_v46  ;;  %1125 = vset.pattern.permute.xlu1 %v1196_v39  ;;  %1124 = vset.pattern.permute.xlu0 %v1196_v39  ;;  %v1437_v44 = vsub.s32 0, %v1371_v29  ;;  %v1440_v46 = vsub.s32 1, %v1371_v29 }
 0x182   :  { %v409_v60 = vsel %vm397_vm3, %v376_v56, %v408_v52  ;;  %v398_v61 = vsel %vm397_vm3, %v344_v57, %v396_v53  ;;  %v388_v4 = vrot.slane %v1385_v36, %v1379_v31  ;;  %v356_v5 = vrot.slane %v1387_v37, %v1379_v31 }
 0x183   :  { %v1445_v49 = vsub.s32 4, %v1371_v29 }
 0x185   :  { %v304_v50 = vpop.xlane.xlu1 %303  ;;  %v1399_v51 = vpop.xlane.xlu0 %287 }
 0x186   :  { %v380_v54 = vrot.slane %v304_v50, %v1379_v31  ;;  %v348_v55 = vrot.slane %v1399_v51, %v1379_v31 }
 0x188   :  { %v410_v0 = vsel %vm399_vm4, %v380_v54, %v409_v60  ;;  %v400_v1 = vsel %vm399_vm4, %v348_v55, %v398_v61  ;;  %v1452_v55 = vsub.s32 5, %v1371_v29 }
 0x189   :  { %v306_v58 = vpop.xlane.xlu1 %305  ;;  %v1410_v59 = vpop.xlane.xlu0 %289 }
 0x18a   :  { %v384_v62 = vrot.slane %v306_v58, %v1379_v31  ;;  %v352_v63 = vrot.slane %v1410_v59, %v1379_v31 }
 0x18c   :  { %v411_v2 = vsel %vm401_vm5, %v384_v62, %v410_v0  ;;  %v402_v3 = vsel %vm401_vm5, %v352_v63, %v400_v1  ;;  %v1459_v62 = vsub.s32 2, %v1371_v29  ;;  %v1462_v63 = vsub.s32 6, %v1371_v29 }
 0x18d   :  { %v310_v6 = vpop.xlane.xlu1 %309  ;;  %v1425_v7 = vpop.xlane.xlu0 %293  ;;  %v412_v13 = vsel %vm403_vm6, %v388_v4, %v411_v2  ;;  %v404_v14 = vsel %vm403_vm6, %v356_v5, %v402_v3 }
 0x18e   :  { %v392_v8 = vrot.slane %v310_v6, %v1379_v31  ;;  %v360_v9 = vrot.slane %v1425_v7, %v1379_v31 }
 0x190   :  { %v413_v25 = vsel %vm405_vm7, %v392_v8, %v412_v13  ;;  %v406_v32 = vsel %vm405_vm7, %v360_v9, %v404_v14  ;;  %v1468_v8 = vsub.s32 7, %v1371_v29 }
 0x191   :  { %v420_v33 = vsel %vm416_vm8, %v413_v25, -inf  ;;  %v417_v38 = vsel %vm416_vm8, %v406_v32, -inf  ;;  %v1475_v25 = vsub.s32 3, %v1371_v29 }
 0x192   :  { %421 = vmax.xlane.f32.xlu1 %v420_v33  ;;  %418 = vmax.xlane.f32.xlu0 %v417_v38 }
 0x21f   :  { %v1442_v48 = vpop.xlane.xlu0 %418  ;;  %v422_v52 = vpop.xlane.xlu1 %421 }
 0x220   :  { %v428_v53 = vrot.slane %v1442_v48, %v1437_v44  ;;  %v432_v54 = vrot.slane %v1442_v48, %v1440_v46  ;;  %v476_v56 = vrot.slane %v422_v52, %v1445_v49  ;;  %v460_v57 = vrot.slane %v422_v52, %v1437_v44 }
 0x221   :  { %v480_v0 = vrot.slane %v422_v52, %v1452_v55  ;;  %v464_v2 = vrot.slane %v422_v52, %v1440_v46 }
 0x222   :  { %v505_v60 = vsub.f32 %v1363_v24, %v428_v53  ;;  %v506_v61 = vsub.f32 %v1375_v30, %v432_v54  ;;  %v517_v1 = vsub.f32 %v304_v50, %v476_v56  ;;  %v513_v3 = vsub.f32 %v1361_v19, %v460_v57 }
 0x223   :  { %v484_v24 = vrot.slane %v422_v52, %v1462_v63  ;;  %v518_v30 = vsub.f32 %v306_v58, %v480_v0  ;;  %v514_v13 = vsub.f32 %v1373_v21, %v464_v2  ;;  %v436_v50 = vrot.slane %v1442_v48, %v1459_v62 }
 0x224   :  { %v521_v4 = vmul.f32 1.442695, %v505_v60  ;;  %v523_v5 = vmul.f32 1.442695, %v506_v61  ;;  %v545_v9 = vmul.f32 1.442695, %v517_v1  ;;  %v488_v19 = vrot.slane %v422_v52, %v1468_v8 }
 0x225   :  { %v537_v14 = vmul.f32 1.442695, %v513_v3  ;;  %v519_v32 = vsub.f32 %v1385_v36, %v484_v24  ;;  %v547_v33 = vmul.f32 1.442695, %v518_v30  ;;  %v468_v58 = vrot.slane %v422_v52, %v1459_v62 }
 0x226   :  { %1136 = vpow2.f32 %v521_v4  ;;  %v539_v38 = vmul.f32 1.442695, %v514_v13  ;;  %v507_v21 = vsub.f32 %v1359_v17, %v436_v50  ;;  %v520_v39 = vsub.f32 %v310_v6, %v488_v19 }
 0x227   :  { %1138 = vpow2.f32 %v523_v5  ;;  %v549_v53 = vmul.f32 1.442695, %v519_v32  ;;  %v515_v54 = vsub.f32 %v1357_v10, %v468_v58  ;;  %v440_v56 = vrot.slane %v1442_v48, %v1475_v25 }
 0x228   :  { %1140 = vpow2.f32 %v545_v9  ;;  %v525_v57 = vmul.f32 1.442695, %v507_v21  ;;  %v551_v61 = vmul.f32 1.442695, %v520_v39  ;;  %v472_v17 = vrot.slane %v422_v52, %v1475_v25 }
 0x229   :  { %1142 = vpow2.f32 %v537_v14  ;;  %v541_v6 = vmul.f32 1.442695, %v515_v54  ;;  %v508_v10 = vsub.f32 %v1367_v27, %v440_v56  ;;  %v444_v3 = vrot.slane %v1442_v48, %v1445_v49 }
 0x22a   :  { %1144 = vpow2.f32 %v547_v33  ;;  %v516_v2 = vsub.f32 %v1365_v26, %v472_v17  ;;  %v448_v24 = vrot.slane %v1442_v48, %v1452_v55  ;;  %v452_v13 = vrot.slane %v1442_v48, %v1462_v63 }
 0x22b   :  { %1146 = vpow2.f32 %v539_v38  ;;  %v527_v52 = vmul.f32 1.442695, %v508_v10  ;;  %v509_v30 = vsub.f32 %v1399_v51, %v444_v3  ;;  %v456_v51 = vrot.slane %v1442_v48, %v1468_v8 }
 0x22c   :  { %1148 = vpow2.f32 %v549_v53  ;;  %v543_v5 = vmul.f32 1.442695, %v516_v2  ;;  %v510_v14 = vsub.f32 %v1410_v59, %v448_v24  ;;  %v511_v33 = vsub.f32 %v1387_v37, %v452_v13 }
 0x22d   :  { %1150 = vpow2.f32 %v525_v57  ;;  %v529_v50 = vmul.f32 1.442695, %v509_v30  ;;  %v512_v59 = vsub.f32 %v1425_v7, %v456_v51 }
 0x22e   :  { %1152 = vpow2.f32 %v551_v61  ;;  %v531_v58 = vmul.f32 1.442695, %v510_v14  ;;  %v533_v21 = vmul.f32 1.442695, %v511_v33 }
 0x22f   :  { %1154 = vpow2.f32 %v541_v6  ;;  %v535_v37 = vmul.f32 1.442695, %v512_v59 }
 0x230   :  { %v1484_v60 = vpop.eup %1136  ;;  %1156 = vpow2.f32 %v527_v52 }
 0x231   :  { %v1486_v36 = vpop.eup %1138  ;;  %570 = vperm.xlu0 %1124, %v1484_v60   ;;  %1158 = vpow2.f32 %v543_v5 }
 0x232   :  { %573 = vperm.xlu1 %1125, %v1486_v36   ;;  %v1492_v0 = vpop.eup %1140  ;;  %1160 = vpow2.f32 %v529_v50 }
 0x233   :  { %v1494_v1 = vpop.eup %1142  ;;  %1162 = vpow2.f32 %v531_v58 }
 0x234   :  { %v1501_v4 = vpop.eup %1144  ;;  %1164 = vpow2.f32 %v533_v21 }
 0x235   :  { %606 = vperm.xlu0 %1124, %v1492_v0   ;;  %v1503_v27 = vpop.eup %1146  ;;  %1166 = vpow2.f32 %v535_v37 }
 0x236   :  { %594 = vperm.xlu1 %1125, %v1494_v1   ;;  %v1510_v26 = vpop.eup %1148 }
 0x237   :  { %v1512_v9 = vpop.eup %1150 }
 0x238   :  { %v1519_v19 = vpop.eup %1152 }
 0x239   :  { %609 = vperm.xlu0 %1124, %v1501_v4   ;;  %v1521_v32 = vpop.eup %1154 }
 0x23a   :  { %597 = vperm.xlu1 %1125, %v1503_v27   ;;  %v1528_v38 = vpop.eup %1156 }
 0x23b   :  { %v1534_v39 = vpop.eup %1158 }
 0x23c   :  { %v1539_v48 = vpop.eup %1160 }
 0x23d   :  { %612 = vperm.xlu0 %1124, %v1510_v26  }
 0x23e   :  { %576 = vperm.xlu1 %1125, %v1512_v9  }
 0x241   :  { %615 = vperm.xlu0 %1124, %v1519_v19  }
 0x242   :  { %600 = vperm.xlu1 %1125, %v1521_v32  }
 0x245   :  { %819 = vrot.lane.b32.xlu0 %v1280_v15, %s1197_s3  ;;  %v1544_v15 = vpop.eup %1162 }
 0x246   :  { %579 = vperm.xlu1 %1125, %v1528_v38  }
 0x249   :  { %837 = vrot.lane.b32.xlu0 %v1299_v23, %s1197_s3  ;;  %v1549_v23 = vpop.eup %1164 }
 0x24a   :  { %603 = vperm.xlu1 %1125, %v1534_v39   ;;  %v1554_v7 = vpop.eup %1166 }
 0x24d   :  { %839 = vrot.lane.b32.xlu0 %v1274_v12, %s1197_s3 }
 0x24e   :  { %582 = vperm.xlu1 %1125, %v1539_v48  }
 0x251   :  { %841 = vrot.lane.b32.xlu0 %v1290_v20, %s1197_s3 }
 0x252   :  { %585 = vperm.xlu1 %1125, %v1544_v15  }
 0x255   :  { %843 = vrot.lane.b32.xlu0 %v1319_v41, %s1197_s3 }
 0x256   :  { %588 = vperm.xlu1 %1125, %v1549_v23  }
 0x259   :  { %845 = vrot.lane.b32.xlu0 %v1331_v47, %s1197_s3 }
 0x25a   :  { %591 = vperm.xlu1 %1125, %v1554_v7  }
 0x25e   :  { %821 = vrot.lane.b32.xlu1 %v1297_v22, %s1197_s3 }
 0x262   :  { %835 = vrot.lane.b32.xlu1 %v1282_v16, %s1197_s3 }
 0x266   :  { %823 = vrot.lane.b32.xlu1 %v1272_v11, %s1197_s3 }
 0x26a   :  { %825 = vrot.lane.b32.xlu1 %v1286_v18, %s1197_s3 }
 0x26e   :  { %827 = vrot.lane.b32.xlu1 %v1317_v40, %s1197_s3 }
 0x272   :  { %829 = vrot.lane.b32.xlu1 %v1327_v45, %s1197_s3 }
 0x276   :  { %831 = vrot.lane.b32.xlu1 %v1310_v34, %s1197_s3 }
 0x2b0   :  { %v571_v20 = vpop.permute.xlu0 %570 }
 0x2b1   :  { %v574_v12 = vpop.permute.xlu1 %573  ;;  %v620_v59 = vrot.slane %v571_v20, %v1379_v31 }
 0x2b2   :  { %v624_v58 = vrot.slane %v574_v12, %v1379_v31 }
 0x2b4   :  { %v607_v41 = vpop.permute.xlu0 %606 }
 0x2b5   :  { %v595_v22 = vpop.permute.xlu1 %594  ;;  %v668_v17 = vrot.slane %v607_v41, %v1379_v31 }
 0x2b6   :  { %v652_v57 = vrot.slane %v595_v22, %v1379_v31 }
 0x2b8   :  { %v610_v53 = vpop.permute.xlu0 %609 }
 0x2b9   :  { %v598_v16 = vpop.permute.xlu1 %597  ;;  %v672_v2 = vrot.slane %v610_v53, %v1379_v31 }
 0x2ba   :  { %v656_v18 = vrot.slane %v598_v16, %v1379_v31  ;;  %v681_v16 = vsel %vm393_vm1, %v624_v58, %v620_v59 }
 0x2bc   :  { %v613_v54 = vpop.permute.xlu0 %612  ;;  %v688_v61 = vsel %vm393_vm1, %v656_v18, %v652_v57 }
 0x2bd   :  { %v577_v47 = vpop.permute.xlu1 %576  ;;  %v676_v52 = vrot.slane %v613_v54, %v1379_v31 }
 0x2be   :  { %v628_v21 = vrot.slane %v577_v47, %v1379_v31 }
 0x2c0   :  { %v616_v10 = vpop.permute.xlu0 %615 }
 0x2c1   :  { %v601_v11 = vpop.permute.xlu1 %600  ;;  %v680_v30 = vrot.slane %v616_v10, %v1379_v31 }
 0x2c2   :  { %v660_v40 = vrot.slane %v601_v11, %v1379_v31  ;;  %v682_v11 = vsel %vm395_vm2, %v628_v21, %v681_v16 }
 0x2c4   :  { %v689_v6 = vsel %vm395_vm2, %v660_v40, %v688_v61 }
 0x2c5   :  { %v580_v56 = vpop.permute.xlu1 %579 }
 0x2c6   :  { %v632_v37 = vrot.slane %v580_v56, %v1379_v31 }
 0x2c8   :  { %v683_v12 = vsel %vm397_vm3, %v632_v37, %v682_v11 }
 0x2c9   :  { %v604_v45 = vpop.permute.xlu1 %603 }
 0x2ca   :  { %v664_v34 = vrot.slane %v604_v45, %v1379_v31 }
 0x2cc   :  { %v690_v3 = vsel %vm397_vm3, %v664_v34, %v689_v6  ;;  %v820_v34 = vpop.permute.xlu0 %819 }
 0x2cd   :  { %v691_v5 = vsel %vm399_vm4, %v668_v17, %v690_v3  ;;  %v583_v24 = vpop.permute.xlu1 %582 }
 0x2ce   :  { %v692_v13 = vsel %vm401_vm5, %v672_v2, %v691_v5  ;;  %v636_v22 = vrot.slane %v583_v24, %v1379_v31 }
 0x2cf   :  { %v693_v14 = vsel %vm403_vm6, %v676_v52, %v692_v13 }
 0x2d0   :  { %v694_v50 = vsel %vm405_vm7, %v680_v30, %v693_v14  ;;  %v684_v20 = vsel %vm399_vm4, %v636_v22, %v683_v12  ;;  %v838_v6 = vpop.permute.xlu0 %837 }
 0x2d1   :  { %v586_v51 = vpop.permute.xlu1 %585  ;;  %v700_v33 = vsel %vm416_vm8, %v694_v50, 0.0 }
 0x2d2   :  { %701 = vadd.xlane.f32.xlu0 %v700_v33  ;;  %v640_v53 = vrot.slane %v586_v51, %v1379_v31 }
 0x2d4   :  { %v685_v47 = vsel %vm401_vm5, %v640_v53, %v684_v20  ;;  %v840_v2 = vpop.permute.xlu0 %839 }
 0x2d5   :  { %v589_v41 = vpop.permute.xlu1 %588 }
 0x2d6   :  { %v644_v54 = vrot.slane %v589_v41, %v1379_v31 }
 0x2d8   :  { %v686_v40 = vsel %vm403_vm6, %v644_v54, %v685_v47  ;;  %v842_v52 = vpop.permute.xlu0 %841 }
 0x2d9   :  { %v592_v18 = vpop.permute.xlu1 %591 }
 0x2da   :  { %v648_v56 = vrot.slane %v592_v18, %v1379_v31 }
 0x2dc   :  { %v687_v57 = vsel %vm405_vm7, %v648_v56, %v686_v40  ;;  %v844_v24 = vpop.permute.xlu0 %843 }
 0x2dd   :  { %v697_v45 = vsel %vm416_vm8, %v687_v57, 0.0  ;;  %v822_v61 = vpop.permute.xlu1 %821 }
 0x2de   :  { %698 = vadd.xlane.f32.xlu1 %v697_v45 }
 0x2e0   :  { %v846_v13 = vpop.permute.xlu0 %845 }
 0x2e1   :  { %v836_v17 = vpop.permute.xlu1 %835 }
 0x2e5   :  { %v824_v10 = vpop.permute.xlu1 %823 }
 0x2e8   :  { %847 = vrot.lane.b32.xlu0 %v1312_v35, %s1197_s3 }
 0x2e9   :  { %v826_v3 = vpop.permute.xlu1 %825 }
 0x2ec   :  { %849 = vrot.lane.b32.xlu0 %v1323_v43, %s1197_s3 }
 0x2ed   :  { %v828_v5 = vpop.permute.xlu1 %827 }
 0x2ef   :  { %833 = vrot.lane.b32.xlu1 %v1321_v42, %s1197_s3 }
 0x2f1   :  { %v830_v30 = vpop.permute.xlu1 %829 }
 0x2f5   :  { %v1611_v35 = vpop.permute.xlu1 %831 }
 0x35f   :  { %v702_v14 = vpop.xlane.xlu0 %701 }
 0x360   :  { %1168 = vrcp.f32 %v702_v14 }
 0x36a   :  { %v1169_v50 = vpop.eup %1168 }
 0x36b   :  { %v699_v43 = vpop.xlane.xlu1 %698  ;;  %v746_v51 = vrot.slane %v1169_v50, %v1440_v46  ;;  %v742_v59 = vrot.slane %v1169_v50, %v1437_v44  ;;  %v750_v41 = vrot.slane %v1169_v50, %v1459_v62  ;;  %v766_v45 = vrot.slane %v1169_v50, %v1462_v63 }
 0x36c   :  { %1170 = vrcp.f32 %v699_v43 }
 0x36d   :  { %v796_v22 = vmul.f32 %v1503_v27, %v746_v51  ;;  %v795_v11 = vmul.f32 %v1494_v1, %v742_v59  ;;  %v758_v1 = vrot.slane %v1169_v50, %v1445_v49 }
 0x36f   :  { %v876_v12 = vmul.f32 %v838_v6, %v796_v22  ;;  %v799_v56 = vmul.f32 %v1492_v0, %v758_v1 }
 0x376   :  { %v1171_v42 = vpop.eup %1170 }
 0x377   :  { %v714_v33 = vrot.slane %v1171_v42, %v1440_v46  ;;  %v710_v58 = vrot.slane %v1171_v42, %v1437_v44  ;;  %v718_v54 = vrot.slane %v1171_v42, %v1459_v62  ;;  %v797_v46 = vmul.f32 %v1521_v32, %v750_v41 }
 0x378   :  { %v754_v44 = vrot.slane %v1169_v50, %v1475_v25  ;;  %v722_v27 = vrot.slane %v1171_v42, %v1475_v25  ;;  %v726_v32 = vrot.slane %v1171_v42, %v1445_v49  ;;  %v734_v0 = vrot.slane %v1171_v42, %v1462_v63 }
 0x379   :  { %v788_v21 = vmul.f32 %v1486_v36, %v714_v33  ;;  %v787_v37 = vmul.f32 %v1484_v60, %v710_v58  ;;  %v875_v36 = vmul.f32 %v836_v17, %v795_v11  ;;  %v789_v60 = vmul.f32 %v1512_v9, %v718_v54 }
 0x37a   :  { %v798_v20 = vmul.f32 %v1534_v39, %v754_v44  ;;  %v877_v18 = vmul.f32 %v840_v2, %v797_v46  ;;  %v790_v47 = vmul.f32 %v1528_v38, %v722_v27  ;;  %v762_v9 = vrot.slane %v1169_v50, %v1452_v55 }
 0x37b   :  { %v868_v16 = vmul.f32 %v822_v61, %v788_v21  ;;  %v867_v53 = vmul.f32 %v820_v34, %v787_v37  ;;  %v869_v62 = vmul.f32 %v824_v10, %v789_v60  ;;  %v791_v57 = vmul.f32 %v1539_v48, %v726_v32 }
 0x37c   :  { %v878_v40 = vmul.f32 %v842_v52, %v798_v20  ;;  %v870_v25 = vmul.f32 %v826_v3, %v790_v47  ;;  %v730_v39 = vrot.slane %v1171_v42, %v1452_v55  ;;  %v879_v61 = vmul.f32 %v844_v24, %v799_v56  ;;  %v848_v3 = vpop.permute.xlu0 %847 }
 0x37d   :  { %903 = vperm.xlu0 %1124, %v868_v16   ;;  %900 = vperm.xlu1 %1125, %v867_v53   ;;  %v871_v38 = vmul.f32 %v828_v5, %v791_v57  ;;  %v800_v49 = vmul.f32 %v1501_v4, %v762_v9  ;;  %v801_v17 = vmul.f32 %v1510_v26, %v766_v45  ;;  %v834_v5 = vpop.permute.xlu1 %833 }
 0x37e   :  { %v792_v34 = vmul.f32 %v1544_v15, %v730_v39  ;;  %v770_v48 = vrot.slane %v1169_v50, %v1468_v8  ;;  %v738_v55 = vrot.slane %v1171_v42, %v1468_v8  ;;  %v793_v2 = vmul.f32 %v1549_v23, %v734_v0 }
 0x37f   :  { %v880_v6 = vmul.f32 %v846_v13, %v800_v49  ;;  %v881_v4 = vmul.f32 %v848_v3, %v801_v17 }
 0x380   :  { %v872_v10 = vmul.f32 %v830_v30, %v792_v34  ;;  %v802_v15 = vmul.f32 %v1519_v19, %v770_v48  ;;  %v794_v63 = vmul.f32 %v1554_v7, %v738_v55  ;;  %v873_v52 = vmul.f32 %v1611_v35, %v793_v2  ;;  %v850_v26 = vpop.permute.xlu0 %849 }
 0x381   :  { %927 = vperm.xlu0 %1124, %v876_v12   ;;  %924 = vperm.xlu1 %1125, %v875_v36   ;;  %v1043_v55 = vadd.s32 4294967288, %v1369_v28 }
 0x382   :  { %v882_v24 = vmul.f32 %v850_v26, %v802_v15  ;;  %v874_v8 = vmul.f32 %v834_v5, %v794_v63 }
 0x385   :  { %930 = vperm.xlu0 %1124, %v877_v18   ;;  %906 = vperm.xlu1 %1125, %v869_v62  }
 0x389   :  { %933 = vperm.xlu0 %1124, %v878_v40   ;;  %909 = vperm.xlu1 %1125, %v870_v25  }
 0x38d   :  { %936 = vperm.xlu0 %1124, %v879_v61   ;;  %912 = vperm.xlu1 %1125, %v871_v38  }
 0x391   :  { %939 = vperm.xlu0 %1124, %v880_v6   ;;  %915 = vperm.xlu1 %1125, %v872_v10   ;;  %v1034_v6 = vstv %s1700_s4  ;;  %v1046_v10 = vsub.s32 %v1043_v55, %v1371_v29 }
 0x395   :  { %918 = vperm.xlu1 %1125, %v873_v52   ;;  %942 = vperm.xlu0 %1124, %v881_v4  }
 0x399   :  { %921 = vperm.xlu1 %1125, %v874_v8   ;;  %945 = vperm.xlu0 %1124, %v882_v24  }
 0x3fc   :  { %v901_v30 = vpop.permute.xlu1 %900  ;;  %v904_v23 = vpop.permute.xlu0 %903 }
 0x3fd   :  { %v950_v58 = vrot.slane %v901_v30, %v1379_v31  ;;  %v954_v59 = vrot.slane %v904_v23, %v1379_v31 }
 0x3ff   :  { %v1011_v12 = vsel %vm393_vm1, %v954_v59, %v950_v58 }
 0x400   :  { %v925_v13 = vpop.permute.xlu1 %924  ;;  %v928_v14 = vpop.permute.xlu0 %927 }
 0x401   :  { %v982_v21 = vrot.slane %v925_v13, %v1379_v31  ;;  %v986_v37 = vrot.slane %v928_v14, %v1379_v31 }
 0x403   :  { %v1018_v36 = vsel %vm393_vm1, %v986_v37, %v982_v21 }
 0x404   :  { %v907_v43 = vpop.permute.xlu1 %906  ;;  %v931_v50 = vpop.permute.xlu0 %930 }
 0x405   :  { %v958_v22 = vrot.slane %v907_v43, %v1379_v31  ;;  %v990_v41 = vrot.slane %v931_v50, %v1379_v31 }
 0x407   :  { %v1012_v20 = vsel %vm395_vm2, %v958_v22, %v1011_v12  ;;  %v1019_v1 = vsel %vm395_vm2, %v990_v41, %v1018_v36 }
 0x408   :  { %v910_v42 = vpop.permute.xlu1 %909  ;;  %v934_v19 = vpop.permute.xlu0 %933 }
 0x409   :  { %v962_v16 = vrot.slane %v910_v42, %v1379_v31  ;;  %v994_v53 = vrot.slane %v934_v19, %v1379_v31 }
 0x40b   :  { %v1013_v47 = vsel %vm397_vm3, %v962_v16, %v1012_v20  ;;  %v1020_v32 = vsel %vm397_vm3, %v994_v53, %v1019_v1 }
 0x40c   :  { %v913_v51 = vpop.permute.xlu1 %912  ;;  %v937_v7 = vpop.permute.xlu0 %936 }
 0x40d   :  { %v966_v11 = vrot.slane %v913_v51, %v1379_v31  ;;  %v998_v54 = vrot.slane %v937_v7, %v1379_v31 }
 0x40f   :  { %v1014_v56 = vsel %vm399_vm4, %v966_v11, %v1013_v47  ;;  %v1021_v9 = vsel %vm399_vm4, %v998_v54, %v1020_v32 }
 0x410   :  { %v916_v33 = vpop.permute.xlu1 %915  ;;  %v940_v35 = vpop.permute.xlu0 %939 }
 0x411   :  { %v970_v60 = vrot.slane %v916_v33, %v1379_v31  ;;  %v1002_v27 = vrot.slane %v940_v35, %v1379_v31 }
 0x413   :  { %v1015_v57 = vsel %vm401_vm5, %v970_v60, %v1014_v56  ;;  %v1022_v39 = vsel %vm401_vm5, %v1002_v27, %v1021_v9 }
 0x414   :  { %v919_v46 = vpop.permute.xlu1 %918  ;;  %v943_v44 = vpop.permute.xlu0 %942 }
 0x415   :  { %v974_v18 = vrot.slane %v919_v46, %v1379_v31  ;;  %v1006_v62 = vrot.slane %v943_v44, %v1379_v31 }
 0x417   :  { %v1016_v38 = vsel %vm403_vm6, %v974_v18, %v1015_v57  ;;  %v1023_v49 = vsel %vm403_vm6, %v1006_v62, %v1022_v39 }
 0x418   :  { %v922_v40 = vpop.permute.xlu1 %921  ;;  %v946_v25 = vpop.permute.xlu0 %945 }
 0x419   :  { %v978_v45 = vrot.slane %v922_v40, %v1379_v31  ;;  %v1010_v61 = vrot.slane %v946_v25, %v1379_v31 }
 0x41b   :  { %v1017_v34 = vsel %vm405_vm7, %v978_v45, %v1016_v38  ;;  %v1024_v0 = vsel %vm405_vm7, %v1010_v61, %v1023_v49 }
 0x41c   :  { %v1027_v17 = vsel %vm416_vm8, %v1017_v34, 0.0  ;;  %v1030_v48 = vsel %vm416_vm8, %v1024_v0, 0.0 }
 0x41d   :  { %1028 = vadd.xlane.f32.xlu1 %v1027_v17  ;;  %1031 = vadd.xlane.f32.xlu0 %v1030_v48 }
 0x4aa   :  { %v1029_v2 = vpop.xlane.xlu1 %1028  ;;  %v1032_v3 = vpop.xlane.xlu0 %1031 }
 0x4ab   :  { %v1035_v4 = vadd.f32 %v1034_v6, %v1029_v2  ;;  %v1036_v15 = vadd.f32 %v1034_v6, %v1032_v3 }
 0x4ad   :  { %v1042_v63 = vrot.slane %v1035_v4, %v1379_v31  ;;  %v1047_v52 = vrot.slane %v1036_v15, %v1046_v10 }
 0x4af   :  { %v1049_v26 = vsel %vm1048_vm9, %v1047_v52, %v1042_v63 }
 0x4b0   :  { %1052 = vst.msk [vmem:[#allocation3] sm:$0x1] %vm1051_vm10, %v1049_v26 }
 0x4b1   :  { %1183 = shalt.err (!%p1180_p4)
}
 0x4b2   :  { %s1184_s21 = scalar_lea.hbm %s1701_s5, 16 }
 0x4b3   :  { %p1185_p5 = scmp.ne.s32.totalorder %s1701_s5, %s1184_s21  ;;  %p1188_p6 = scmp.lt.u32.totalorder %s1184_s21, %s1701_s5 }
 0x4b5   :  { %p1190_p7 = pnand %p1188_p6, %p1185_p5 }
 0x4b7   :  { %1193 = shalt.err (!%p1190_p7)
}
 0x4b8   :  { %1062 = dma.vmem_to_hbm [thread:$0]  %s1060_s17, 16, %s1701_s5, [#allocation4]  }
 0x4b9   :  { %1194 = dma.done.wait [#allocation4], 16  }
 0x4ba   :  { %1195 = vsyncadd [#allocation4], 4294967280 }
 0x4bb   :  { %1066 = vsyncpa [#allocation4], 1 }

</bundles_post_ra>
